<compile_context>
chip_gen: v7x
topology: tpu7x:2x2x1
jax: 0.10.0
libtpu: 0.0.40
codegen_flags: <defaults>
</compile_context>

<pallas_src>
import jax
import jax.numpy as jnp
from jax.experimental import pallas as pl
from jax.experimental.pallas import tpu as pltpu


def _conv_relu_ncw_kernel(w_ref, p_ref, o_ref):
    # w_ref: (N, K) resident weight
    # p_ref: (1, K, TM) patch tile (time on lanes)
    # o_ref: (1, N, TM) output tile in NCW layout (time on lanes)
    acc = jnp.dot(w_ref[...], p_ref[0], preferred_element_type=jnp.float32)
    o_ref[0] = jnp.maximum(acc, 0.0).astype(o_ref.dtype)


def _round_up(v, m):
    return ((v + m - 1) // m) * m


def encoder_forward(x, weight, kernel_size, *, tm=1024):
    """x: [B, L] float32; weight: PyTorch Conv1d layout [N, 1, K]; returns [B, N, T_out]."""
    B, L = x.shape
    N = weight.shape[0]
    K = int(kernel_size)
    stride = K // 2
    T_out = (L - K) // stride + 1

    # Time tile: multiple of 128 (lane-dense), clamped for tiny inputs.
    tm = max(128, _round_up(tm, 128))
    tm_eff = min(tm, _round_up(T_out, 128))
    T_pad = _round_up(T_out, tm_eff)

    # --- glue: patch matrix in (B, K, T) layout, time on the minor axis ---
    # P[b, k, t] = x[b, t*stride + k]
    rows = [x[:, k : k + stride * (T_out - 1) + 1 : stride] for k in range(K)]
    patches = jnp.stack(rows, axis=1)                            # [B, K, T_out]
    if T_pad != T_out:
        patches = jnp.pad(patches, ((0, 0), (0, 0), (0, T_pad - T_out)))

    w2 = weight[:, 0, :].astype(x.dtype)                         # [N, K]

    grid = (B, T_pad // tm_eff)
    out = pl.pallas_call(
        _conv_relu_ncw_kernel,
        out_shape=jax.ShapeDtypeStruct((B, N, T_pad), x.dtype),
        grid_spec=pltpu.PrefetchScalarGridSpec(
            num_scalar_prefetch=0,
            grid=grid,
            in_specs=[
                pl.BlockSpec((N, K), lambda b, i: (0, 0)),            # resident weight
                pl.BlockSpec((1, K, tm_eff), lambda b, i: (b, 0, i)),  # streamed patches
            ],
            out_specs=pl.BlockSpec((1, N, tm_eff), lambda b, i: (b, 0, i)),
        ),
        compiler_params=pltpu.CompilerParams(
            dimension_semantics=("parallel", "parallel")),
    )(w2, patches)

    if T_pad != T_out:
        out = out[:, :, :T_out]
    return out                                                   # [B, N, T_out] (NCW)


def _reference(x, weight, kernel_size):
    stride = kernel_size // 2
    ref = jax.lax.conv_general_dilated(
        x[:, None, :], weight, window_strides=(stride,), padding="VALID",
        dimension_numbers=("NCH", "OIH", "NCH"))
    return jnp.maximum(ref, 0.0)


if __name__ == "__main__":
    key = jax.random.PRNGKey(0)
    k_x, k_w, k_x2 = jax.random.split(key, 3)

    B = 2
    kernel_size, out_channels, in_channels = 4, 64, 1
    stride = kernel_size // 2

    # deterministic init matching nn.Conv1d default (kaiming_uniform a=sqrt(5)
    # -> U(-1/sqrt(fan_in), 1/sqrt(fan_in)))
    fan_in = in_channels * kernel_size
    bound = 1.0 / (fan_in ** 0.5)
    weight = jax.random.uniform(
        k_w, (out_channels, in_channels, kernel_size),
        minval=-bound, maxval=bound, dtype=jnp.float32)

    # --- small case (exactly-tiled after clamping) ---
    L = 64
    x = jax.random.normal(k_x, (B, L), dtype=jnp.float32)
    y = jax.block_until_ready(encoder_forward(x, weight, kernel_size))
    ref = _reference(x, weight, kernel_size)
    T_out = (L - kernel_size) // stride + 1
    assert y.shape == (B, out_channels, T_out), y.shape
    assert jnp.allclose(y, ref, atol=1e-5, rtol=1e-5), float(jnp.max(jnp.abs(y - ref)))

    # --- docstring-like case (T_out=499, exercises the ragged/padded tail) ---
    L2 = 1000
    x2 = jax.random.normal(k_x2, (B, L2), dtype=jnp.float32)
    y2 = jax.block_until_ready(encoder_forward(x2, weight, kernel_size))
    ref2 = _reference(x2, weight, kernel_size)
    T_out2 = (L2 - kernel_size) // stride + 1
    assert y2.shape == (B, out_channels, T_out2), y2.shape
    assert jnp.allclose(y2, ref2, atol=1e-5, rtol=1e-5), float(jnp.max(jnp.abs(y2 - ref2)))

    print("KERNEL_OK")
</pallas_src>

<mosaic_0001>
module attributes {stable_mosaic.version = 11 : i64} {
  func.func @_conv_relu_ncw_kernel(%arg0: i32, %arg1: i32, %arg2: memref<64x4xf32, #tpu.memory_space<vmem>>, %arg3: memref<1x4x128xf32, #tpu.memory_space<vmem>>, %arg4: memref<1x64x128xf32, #tpu.memory_space<vmem>>) attributes {dimension_semantics = [#tpu.dimension_semantics<parallel>, #tpu.dimension_semantics<parallel>], iteration_bounds = array<i64: 2, 1>, scalar_prefetch = 0 : i64, scratch_operands = 0 : i64, tpu.core_type = #tpu.core_type<tc>, window_params = [{pipeline_mode = #tpu.pipeline_mode<synchronous>, transform_indices = @transform_0, window_bounds = array<i64: 64, 4>}, {transform_indices = @transform_1, window_bounds = array<i64: 1, 4, 128>}, {transform_indices = @transform_2, window_bounds = array<i64: 1, 64, 128>}]} {
    %c0 = arith.constant 0 : index
    %c0_0 = arith.constant 0 : index
    %0 = vector.load %arg2[%c0, %c0_0] : memref<64x4xf32, #tpu.memory_space<vmem>>, vector<64x4xf32>
    %c0_1 = arith.constant 0 : index
    %c0_2 = arith.constant 0 : index
    %c0_3 = arith.constant 0 : index
    %1 = vector.load %arg3[%c0_1, %c0_2, %c0_3] : memref<1x4x128xf32, #tpu.memory_space<vmem>>, vector<1x4x128xf32>
    %2 = vector.shape_cast %1 : vector<1x4x128xf32> to vector<4x128xf32>
    %cst = arith.constant dense<0.000000e+00> : vector<64x128xf32>
    %3 = tpu.matmul %0, %2, %cst {dimension_numbers = #tpu.dot_dimension_numbers<[1], [0], [0], [1], [0, 0, 1, 1], [], []>} : vector<64x4xf32>, vector<4x128xf32>, vector<64x128xf32> -> vector<64x128xf32>
    %cst_4 = arith.constant 0.000000e+00 : f32
    %4 = vector.broadcast %cst_4 : f32 to vector<64x128xf32>
    %5 = arith.maximumf %3, %4 : vector<64x128xf32>
    %c0_5 = arith.constant 0 : index
    %c0_6 = arith.constant 0 : index
    %c0_7 = arith.constant 0 : index
    %6 = vector.load %arg4[%c0_5, %c0_6, %c0_7] : memref<1x64x128xf32, #tpu.memory_space<vmem>>, vector<1x64x128xf32>
    %7 = vector.shape_cast %6 : vector<1x64x128xf32> to vector<64x128xf32>
    %8 = vector.shape_cast %5 : vector<64x128xf32> to vector<1x64x128xf32>
    tpu.vector_store %arg4[%c0_5, %c0_6, %c0_7], %8 {strides = array<i32>} : memref<1x64x128xf32, #tpu.memory_space<vmem>>, vector<1x64x128xf32>,
    return
  }
  func.func @transform_0(%arg0: i32, %arg1: i32) -> (i32, i32) {
    %c0_i32 = arith.constant 0 : i32
    %c0_i32_0 = arith.constant 0 : i32
    %c0_i32_1 = arith.constant 0 : i32
    return %c0_i32, %c0_i32_0 : i32, i32
  }
  func.func @transform_1(%arg0: i32, %arg1: i32) -> (i32, i32, i32) {
    %c0_i32 = arith.constant 0 : i32
    %c0_i32_0 = arith.constant 0 : i32
    return %arg0, %c0_i32, %arg1 : i32, i32, i32
  }
  func.func @transform_2(%arg0: i32, %arg1: i32) -> (i32, i32, i32) {
    %c0_i32 = arith.constant 0 : i32
    %c0_i32_0 = arith.constant 0 : i32
    return %arg0, %c0_i32, %arg1 : i32, i32, i32
  }
}

</mosaic_0001>

<bundles_post_ra>
// kernel: tpu_custom_call.1
= control target key start
LH: loop header
LB: loop body
LE: loop exit
PB: predicated region body
PF: predicated region fallthrough
CT: control target
= control target key end

     0   :  { %7 = vsyncpa [#allocation3], 0  ;;  %s766_s0 = inlined_call_operand.vmem [shape: f32[64,4], index: 0, kind: input, shape index: {}]   ;;  %s767_s1 = inlined_call_operand.vmem [shape: f32[2,4,128], index: 1, kind: input, shape index: {}]   ;;  %s768_s2 = inlined_call_operand.hbm [shape: f32[2,64,128], index: 2, kind: output, shape index: {}]  }
   0x1   :  { %9 = vsyncpa [#allocation3 + $0x1], 0  ;;  %s615_s9 = smov 0   ;;  %s617_s10 = smov 0  }
   0x2   :  { %s619_s11 = smov 0   ;;  %s621_s12 = smov 0  }
   0x3   :  { %s623_s13 = smov 0   ;;  %s625_s14 = smov 0  }
   0x4 LB: > { %s413_s15 = sadd.s32 4294967295, %s595_s14   ;;  %s414_s16 = sadd.s32 4294967294, %s595_s14   ;;  %s595_s14 = sphi %s625_s14, %s15_s14   ;;  %s591_s13 = sphi %s623_s13, %s775_s13   ;;  %s587_s12 = sphi %s621_s12, %s774_s12   ;;  %s583_s11 = sphi %s619_s11, %s773_s11   ;;  %s579_s10 = sphi %s617_s10, %s772_s10   ;;  %s575_s9 = sphi %s615_s9, %s771_s9  }
   0x5   : > { %s27_s17 = sadd.s32 1, %s591_s13  ;;  %s85_s18 = sadd.s32 1, %s583_s11 }
   0x6   : > { %p29_p0 = scmp.ge.s32.totalorder %s27_s17, 2  ;;  %p95_p1 = scmp.ne.s32.totalorder %s583_s11, %s579_s10 }
   0x7   : > { %p96_p2 = scmp.eq.s32.totalorder %s413_s15, 1  ;;  %p101_p3 = scmp.ne.s32.totalorder %s579_s10, %s575_s9 }
   0x8   : > { %s777_s17 = smov (%p29_p0, %s27_s17), 0  ;;  %p102_p5 = scmp.eq.s32.totalorder %s414_s16, 1 }
   0x9   : > { %p655_p4 = por %p96_p2, %p95_p1  ;;  %s80_s20 = ssub.s32 %s591_s13, %s777_s17 }
   0xa   : > { %p417_p6 = scmp.ge.s32.totalorder %s595_s14, 1  ;;  %p83_p7 = scmp.eq.s32.totalorder %s80_s20, 0 }
   0xb   : > { %p662_p8 = por %p102_p5, %p101_p3  ;;  %p133_p9 = scmp.lt.s32.totalorder %s595_s14, 3 }
   0xc   : > { %s668_s22 = scalar_select %p83_p7, %s583_s11, %s85_s18  }
   0xd   : > { %p134_p10 = pnand %p417_p6, %p133_p9 }
   0xe   : > { %p157_p11 = scmp.lt.s32.totalorder (!%p134_p10), %s587_s12, 1  ;;  %v164_v0 = vld [vmem:[%s766_s0] sm:$0xff] (!%p134_p10)  ;;  %vm173_vm0 = vcmask (!%p134_p10), 31744   ;;  %vm198_vm1 = vcmask (!%p134_p10), 1043456   ;;  %v165_v3 = vld [vmem:[%s766_s0 + $0x8] sm:$0xff] (!%p134_p10)  ;;  %v166_v5 = vld [vmem:[%s766_s0 + $0x10] sm:$0xff] (!%p134_p10) }
   0xf   : > { %137 = sbr.rel (%p134_p10) target bundleno = 263 (0x107), region = 28  ;;  %v168_v1 = vld [vmem:[%s766_s0 + $0x20] sm:$0xff] (!%p134_p10)  ;;  %446 = vmatprep.mubr.msk.f32.mxu0 (!%p134_p10), %vm173_vm0, %v164_v0  ;;  %v169_v4 = vld [vmem:[%s766_s0 + $0x28] sm:$0xff] (!%p134_p10)  ;;  %v170_v6 = vld [vmem:[%s766_s0 + $0x30] sm:$0xff] (!%p134_p10)  ;;  %s154_s26 = sand.u32 (!%p134_p10), 1, %s579_s10  }
  0x10   : > { %452 = vmatprep.mubr.msk.f32.mxu1 (!%p134_p10), %vm173_vm0, %v168_v1  ;;  %v167_v7 = vld [vmem:[%s766_s0 + $0x18] sm:$0xff] (!%p134_p10)  ;;  %s597_s7 = smov (!%p134_p10), [#allocation2]  }
  0x11   : > { %v171_v8 = vld [vmem:[%s766_s0 + $0x38] sm:$0xff] (!%p134_p10)  ;;  %s521_s8 = sshll.u32 (!%p134_p10), %s597_s7, 4  ;;  %s522_s8 = int_to_ptr.vmem [resolvable:$false] %s521_s8 }
  0x12   : > { %s523_s15 = scalar_lea.vmem (!%p134_p10), %s522_s8, 2048 }
  0x16   : > { %s158_s27 = scalar_select %p157_p11, %s587_s12, 1 }
  0x18   : > { %s419_s28 = sshll.u32 %s158_s27, 2  ;;  %s418_s27 = sshll.u32 %s154_s26, 6 }
  0x19   : > { %s163_s3 = scalar_lea.vmem %s767_s1, %s419_s28  ;;  %s434_s28 = sshll.u32 %s587_s12, 10 }
  0x1a   : > { %v172_v2 = vld [vmem:[%s163_s3] sm:$0xf]  ;;  %s156_s29 = scalar_lea.vmem [#allocation2], %s418_s27  ;;  %s714_s5 = scalar_lea.hbm %s768_s2, %s434_s28 }
  0x1b   : > { %444 = vmatprep.subr.msk.mxu0 %vm198_vm1, %v172_v2  ;;  %458 = vmatprep.subr.msk.mxu1 %vm198_vm1, %v172_v2  ;;  %s338_s30 = sshll.u32 %s156_s29, 4  ;;  %s720_s12 = scalar_lea.sflag [#allocation3], %s154_s26  ;;  %s716_s30 = int_to_ptr.vmem [resolvable:$true] %s338_s30 }
  0x1c   : > { %445 = vmatpush3.msk.msra.mxu0 %vm198_vm1, %v172_v2  ;;  %459 = vmatpush3.msk.msra.mxu1 %vm198_vm1, %v172_v2  ;;  %s517_s6 = scalar_lea.vmem %s716_s30, 1024  ;;  %p524_p1 = scmp.lt.s32.totalorder %s716_s30, %s522_s8 }
  0x1d   : > { %447 = vmatmul.mubr.msk.f32.vlgmr.msra.gmra.mrb[0].mxu0 %vm173_vm0, %v165_v3  ;;  %453 = vmatmul.mubr.msk.f32.vlgmr.msra.gmra.mrb[0].mxu1 %vm173_vm0, %v169_v4  ;;  %p518_p12 = scmp.ne.s32.totalorder %s716_s30, %s517_s6  ;;  %p525_p2 = scmp.lt.s32.totalorder %s523_s15, %s517_s6 }
  0x1e   : > { %449 = vmatprep.mubr.msk.f32.mxu0 %vm173_vm0, %v166_v5  ;;  %455 = vmatprep.mubr.msk.f32.mxu1 %vm173_vm0, %v170_v6 }
  0x1f   : > { %p519_p13 = pnand %p518_p12, %p655_p4  ;;  %p526_p3 = por %p525_p2, %p524_p1 }
  0x21   : > { %450 = vmatmul.mubr.msk.f32.gmra.mrb[2].mxu0 %vm173_vm0, %v167_v7  ;;  %456 = vmatmul.mubr.msk.f32.gmra.mrb[2].mxu1 %vm173_vm0, %v171_v8  ;;  %p520_p0 = pneg %p519_p13 }
  0x23   : > { %p527_p5 = pnand %p526_p3, %p520_p0 }
  0xf0   : > { %v448_v9 = vpop.f32.mrb[0].mxu0  ;;  %v454_v10 = vpop.f32.mrb[0].mxu1 }
  0xf1   : > { %v308_v11 = vmax.f32 %v448_v9, 0.0  ;;  %v312_v12 = vmax.f32 %v454_v10, 0.0  ;;  %v268_v13 = vpop.f32.mrb[1].mxu0  ;;  %v288_v14 = vpop.f32.mrb[1].mxu1 }
  0xf2   : > { %v307_v15 = vmax.f32 %v268_v13, 0.0  ;;  %v311_v16 = vmax.f32 %v288_v14, 0.0 }
  0xf3   : > { %316 = vst [vmem:[%s156_s29 + $0x8] sm:$0xff] %v308_v11  ;;  %320 = vst [vmem:[%s156_s29 + $0x28] sm:$0xff] %v312_v12 }
  0xf4   : > { %315 = vst [vmem:[%s156_s29] sm:$0xff] %v307_v15  ;;  %319 = vst [vmem:[%s156_s29 + $0x20] sm:$0xff] %v311_v16  ;;  %v451_v17 = vpop.f32.mrb[2].mxu0  ;;  %v457_v18 = vpop.f32.mrb[2].mxu1 }
  0xf5   : > { %v310_v19 = vmax.f32 %v451_v17, 0.0  ;;  %v314_v20 = vmax.f32 %v457_v18, 0.0  ;;  %v278_v21 = vpop.f32.mrb[3].mxu0  ;;  %v298_v22 = vpop.f32.mrb[3].mxu1 }
  0xf6   : > { %v309_v23 = vmax.f32 %v278_v21, 0.0  ;;  %v313_v24 = vmax.f32 %v298_v22, 0.0 }
  0xf7   : > { %318 = vst [vmem:[%s156_s29 + $0x18] sm:$0xff] %v310_v19  ;;  %322 = vst [vmem:[%s156_s29 + $0x38] sm:$0xff] %v314_v20 }
  0xf8   : > { %317 = vst [vmem:[%s156_s29 + $0x10] sm:$0xff] %v309_v23  ;;  %321 = vst [vmem:[%s156_s29 + $0x30] sm:$0xff] %v313_v24 }
  0xf9   : > { %530 = shalt.err (!%p527_p5)
}
  0xfa   : > { %s531_s16 = scalar_lea.hbm %s714_s5, 1024  ;;  %s535_s23 = scalar_lea.hbm %s768_s2, 2048 }
  0xfb   : > { %p532_p6 = scmp.ne.s32.totalorder %s714_s5, %s531_s16  ;;  %p536_p10 = scmp.lt.u32.totalorder %s714_s5, %s768_s2 }
  0xfc   : > { %p537_p11 = scmp.lt.u32.totalorder %s535_s23, %s531_s16  ;;  %p539_p13 = scmp.lt.u32.totalorder %s531_s16, %s714_s5 }
  0xfd   : > { %p533_p7 = pnand %p532_p6, %p655_p4 }
  0xfe   : > { %p538_p12 = por %p537_p11, %p536_p10 }
  0xff   : > { %p534_p9 = pneg %p533_p7 }
 0x100   : > { %p540_p0 = por %p539_p13, %p538_p12 }
 0x102   : > { %p541_p1 = pnand %p540_p0, %p534_p9 }
 0x104   : > { %544 = shalt.err (!%p541_p1)
}
 0x105   : > { %s598_s26 = smov 128   ;;  %s599_s27 = smov 8  }
 0x106   : > { %460 = dma.vmem_to_hbm [thread:$0]  (%p655_p4), %s716_s30, 1024, %s714_s5, %s720_s12, %s598_s26, %s598_s26, %s599_s27  }
 0x107 PF: > { %p466_p2 = scmp.ge.s32.totalorder %s595_s14, 2  ;;  %s353_s28 = sand.u32 1, %s575_s9  }
 0x108   : > { %s354_s29 = scalar_lea.sflag [#allocation3], %s353_s28 }
 0x109   : > { %p463_p3 = pnand %p466_p2, %p662_p8 }
 0x10b   : > { %570 = dma.done.wait (!%p463_p3), %s354_s29, 1024  }
 0x10c   : > { %572 = vsyncadd (!%p463_p3), %s354_s29, 4294966272  ;;  %s15_s14 = sadd.s32 1, %s595_s14   ;;  %s771_s9 = smov %s579_s10 }
 0x10d   : > { %p12_p5 = scmp.ge.s32.totalorder %s15_s14, 4   ;;  %s772_s10 = smov %s583_s11 }
 0x10e   : > { %s773_s11 = smov %s668_s22  ;;  %s774_s12 = smov %s591_s13 }
 0x10f   : > { %s775_s13 = smov %s777_s17  ;;  %14 = sbr.rel (!%p12_p5) target bundleno = 4 (0x4), region = 63 }
 0x116   :  { %359 = vsyncpa [#allocation3], 1 }
 0x117   :  { %361 = vsyncpa [#allocation3 + $0x1], 1 }

</bundles_post_ra>
